<compile_context>
chip_gen: v6e
topology: v6e:2x2x1
jax: 0.10.0
libtpu: 0.0.40
codegen_flags: <defaults>
</compile_context>

<pallas_src>
import math

import jax
import jax.numpy as jnp
from jax.experimental import pallas as pl
from jax.experimental.pallas import tpu as pltpu


# ---------------------------------------------------------------------------
# Kernels
# ---------------------------------------------------------------------------

def _make_concat_kernel_lane(widths):
    """2-D path: copy each input tile into its static lane-slice of the output tile."""
    offsets, off = [], 0
    for w in widths:
        offsets.append(off)
        off += w

    def kernel(*refs):
        n = len(widths)
        in_refs, out_ref = refs[:n], refs[n]
        for r, o, w in zip(in_refs, offsets, widths):
            # Static slice along the lane (last) axis -> unmasked full-width stores
            # whenever o / w are 128-aligned (true when inner % 128 == 0).
            out_ref[:, o:o + w] = r[...]

    return kernel


def _make_concat_kernel_chan(channels):
    """3-D path: copy each input tile into its static channel (sublane-axis) slice."""
    offsets, off = [], 0
    for c in channels:
        offsets.append(off)
        off += c

    def kernel(*refs):
        n = len(channels)
        in_refs, out_ref = refs[:n], refs[n]
        for r, o, c in zip(in_refs, offsets, channels):
            # Offsets stay off the lane axis; lane tiles remain dense 128-multiples.
            out_ref[:, o:o + c, :] = r[...]

    return kernel


# ---------------------------------------------------------------------------
# Tiling / per-generation parameters
# ---------------------------------------------------------------------------

def _cdiv(a: int, b: int) -> int:
    return -(-a // b)


def _generation_params():
    """(physical_vmem, per-output-block budget, base scoped-vmem limit) per TPU gen."""
    phys = 0
    try:
        info = pltpu.get_tpu_info()
        phys = int(getattr(info, "vmem_capacity_bytes", 0) or 0)
    except Exception:
        phys = 0
    if phys <= 0:
        phys = 64 << 20                       # conservative default (v7x-sized VMEM)
    if phys >= (128 << 20):                   # v5e / v6e: 128 MiB physical VMEM
        budget, base_limit = 12 << 20, 64 << 20
    else:                                     # v7x: 64 MiB physical VMEM
        budget, base_limit = 10 << 20, 44 << 20
    return phys, budget, base_limit


def _choose_row_tile(outer, row_bytes, itemsize, budget_bytes, min_steps=4):
    """Row tile for the 2-D path: sublane-pack multiple, budget-capped, cdiv grid."""
    pack = {4: 8, 2: 16, 1: 32}.get(itemsize, 8)
    if outer <= pack:
        return outer                          # full extent (allowed by the (8,128) rule)
    max_rows = max(1, budget_bytes // max(row_bytes, 1))
    tile = min(outer, max_rows)
    tile = max(pack, (tile // pack) * pack)   # round DOWN to the sublane pack
    # Keep a few grid steps alive (pipelining / v7x megacore) without pulverizing
    # blocks that are already tiny.
    while tile > pack and _cdiv(outer, tile) < min_steps:
        if _cdiv(outer, tile) >= 2 and tile * row_bytes <= (1 << 20):
            break
        tile = max(pack, ((tile // 2) // pack) * pack)
    return tile


def _choose_tiles_chan(outer, c_total, inner, itemsize, budget_bytes, min_steps=4):
    """(tile_rows, tile_inner) for the 3-D (rows, channels, inner) formulation."""
    per_inner = c_total * itemsize            # bytes per row per inner element
    tile_inner = min(inner, max(128, budget_bytes // max(per_inner, 1)))
    tile_inner = max(128, (tile_inner // 128) * 128)      # lane-dense tiles
    tile_rows = max(1, budget_bytes // max(per_inner * tile_inner, 1))
    tile_rows = min(tile_rows, outer)

    def steps(tr, ti):
        return _cdiv(outer, tr) * _cdiv(inner, ti)

    def block_bytes(tr, ti):
        return tr * c_total * ti * itemsize

    while steps(tile_rows, tile_inner) < min_steps:
        if steps(tile_rows, tile_inner) >= 2 and block_bytes(tile_rows, tile_inner) <= (1 << 20):
            break
        if tile_rows > 1:
            tile_rows = max(1, tile_rows // 2)
        elif tile_inner > 128:
            tile_inner = max(128, ((tile_inner // 2) // 128) * 128)
        else:
            break
    return tile_rows, tile_inner


# ---------------------------------------------------------------------------
# Public op
# ---------------------------------------------------------------------------

def concat(inputs, dim: int = 1):
    """Pallas equivalent of `torch.cat(inputs, dim=dim)`."""
    inputs = list(inputs)
    if not inputs:
        raise ValueError("concat: need at least one input")

    ndim = inputs[0].ndim
    dim = dim % ndim
    dtype = inputs[0].dtype

    # Same contract as torch.cat: matching dtypes and matching non-concat dims.
    for x in inputs:
        if x.ndim != ndim or x.dtype != dtype:
            raise ValueError("concat: all inputs must share rank and dtype")
        for a in range(ndim):
            if a != dim and x.shape[a] != inputs[0].shape[a]:
                raise ValueError("concat: non-concat dims must match")

    # torch.cat accepts zero-sized slabs along the concat dim; drop them here so we
    # never build a width-0 BlockSpec.
    nonempty = [x for x in inputs if x.shape[dim] > 0]
    inputs = nonempty if nonempty else inputs[:1]
    if len(inputs) == 1:
        return inputs[0]

    lead = tuple(inputs[0].shape[:dim])
    trail = tuple(inputs[0].shape[dim + 1:])
    outer = math.prod(lead) if lead else 1
    inner = math.prod(trail) if trail else 1
    channels = tuple(int(x.shape[dim]) for x in inputs)
    c_total = sum(channels)
    out_full_shape = lead + (c_total,) + trail

    itemsize = jnp.dtype(dtype).itemsize
    total_bytes = outer * c_total * inner * itemsize
    if total_bytes == 0:
        # Degenerate: some non-concat dim is zero -> nothing to copy.
        return jnp.zeros(out_full_shape, dtype)

    phys_vmem, budget, base_limit = _generation_params()
    cost = pl.CostEstimate(flops=0, transcendentals=0,
                           bytes_accessed=int(2 * total_bytes))

    if inner >= 128:
        # 3-D formulation: concat offsets on the channel (sublane) axis, lane axis
        # dense, 2-D grid over (row tiles, inner tiles).
        tile_rows, tile_inner = _choose_tiles_chan(outer, c_total, inner, itemsize, budget)
        grid = (_cdiv(outer, tile_rows), _cdiv(inner, tile_inner))
        flat = [x.reshape(outer, c, inner) for x, c in zip(inputs, channels)]
        in_specs = [pl.BlockSpec((tile_rows, c, tile_inner), lambda i, j: (i, 0, j))
                    for c in channels]
        out_spec = pl.BlockSpec((tile_rows, c_total, tile_inner), lambda i, j: (i, 0, j))
        out_shape_flat = jax.ShapeDtypeStruct((outer, c_total, inner), dtype)
        kernel = _make_concat_kernel_chan(channels)
        out_block_bytes = tile_rows * c_total * tile_inner * itemsize
        semantics = ("parallel", "parallel")
    else:
        # 2-D formulation: (rows, C_i * inner); lane offsets (128-aligned only when
        # inner % 128 == 0, otherwise masked stores — inherent to lane-axis concat).
        widths = tuple(c * inner for c in channels)
        w_total = c_total * inner
        row_bytes = w_total * itemsize
        tile_rows = _choose_row_tile(outer, row_bytes, itemsize, budget)
        grid = (_cdiv(outer, tile_rows),)
        flat = [x.reshape(outer, w) for x, w in zip(inputs, widths)]
        in_specs = [pl.BlockSpec((tile_rows, w), lambda i: (i, 0)) for w in widths]
        out_spec = pl.BlockSpec((tile_rows, w_total), lambda i: (i, 0))
        out_shape_flat = jax.ShapeDtypeStruct((outer, w_total), dtype)
        kernel = _make_concat_kernel_lane(widths)
        out_block_bytes = tile_rows * row_bytes
        semantics = ("parallel",)

    # Double-buffered footprint ~= 2 * (sum of input blocks + output block)
    # = 4 * output-block bytes; size the scoped VMEM limit to that (with slack),
    # capped safely below physical VMEM of the detected generation.
    needed = 4 * out_block_bytes + (2 << 20)
    vmem_limit = int(min(phys_vmem - (8 << 20), max(base_limit, needed)))
    vmem_limit = max(vmem_limit, 16 << 20)

    out_flat = pl.pallas_call(
        kernel,
        out_shape=out_shape_flat,
        grid=grid,
        in_specs=in_specs,
        out_specs=out_spec,
        compiler_params=pltpu.CompilerParams(
            dimension_semantics=semantics,   # copy is fully parallel; v7x shards it
            vmem_limit_bytes=vmem_limit,
        ),
        cost_estimate=cost,
    )(*flat)

    return out_flat.reshape(out_full_shape)


class Concat:
    """Mirrors the PyTorch module: concatenates a list of tensors along `dim`."""

    def __init__(self, dim: int = 1):
        self.dim = dim

    def __call__(self, inputs):
        return concat(inputs, dim=self.dim)


if __name__ == "__main__":
    key = jax.random.PRNGKey(0)
    k0, k1, k2, k3, k4, k5, k6 = jax.random.split(key, 7)

    # NCHW inputs with differing channel counts (concat along dim=1) -> 3-D channel path.
    x0 = jax.random.normal(k0, (2, 4, 16, 16), dtype=jnp.float32)
    x1 = jax.random.normal(k1, (2, 6, 16, 16), dtype=jnp.float32)
    x2 = jax.random.normal(k2, (2, 2, 16, 16), dtype=jnp.float32)

    module = Concat(dim=1)
    out = jax.block_until_ready(module([x0, x1, x2]))
    ref = jnp.concatenate([x0, x1, x2], axis=1)
    assert out.shape == (2, 12, 16, 16), out.shape
    assert out.dtype == ref.dtype
    assert bool(jnp.array_equal(out, ref)), "mismatch vs jnp.concatenate reference (dim=1)"

    # Concat along dim=2 (inner = 16 < 128) exercises the 2-D lane-offset path.
    y0 = jax.random.normal(k3, (2, 4, 8, 16), dtype=jnp.float32)
    y1 = jax.random.normal(k4, (2, 4, 4, 16), dtype=jnp.float32)
    out2 = jax.block_until_ready(Concat(dim=2)([y0, y1]))
    ref2 = jnp.concatenate([y0, y1], axis=2)
    assert out2.shape == ref2.shape
    assert bool(jnp.array_equal(out2, ref2)), "mismatch vs jnp.concatenate reference (dim=2)"

    # Concat along the last dim (inner == 1) exercises ragged cdiv row tiling.
    z0 = jax.random.normal(k5, (2, 4, 16, 8), dtype=jnp.float32)
    z1 = jax.random.normal(k6, (2, 4, 16, 24), dtype=jnp.float32)
    out3 = jax.block_until_ready(Concat(dim=-1)([z0, z1]))
    ref3 = jnp.concatenate([z0, z1], axis=-1)
    assert out3.shape == ref3.shape
    assert bool(jnp.array_equal(out3, ref3)), "mismatch vs jnp.concatenate reference (dim=-1)"

    print("KERNEL_OK")
</pallas_src>

<mosaic_0001>
module attributes {stable_mosaic.version = 11 : i64} {
  func.func @kernel(%arg0: i32, %arg1: i32, %arg2: memref<1x4x256xf32, #tpu.memory_space<vmem>>, %arg3: memref<1x6x256xf32, #tpu.memory_space<vmem>>, %arg4: memref<1x2x256xf32, #tpu.memory_space<vmem>>, %arg5: memref<1x12x256xf32, #tpu.memory_space<vmem>>) attributes {dimension_semantics = [#tpu.dimension_semantics<parallel>, #tpu.dimension_semantics<parallel>], iteration_bounds = array<i64: 2, 1>, scalar_prefetch = 0 : i64, scratch_operands = 0 : i64, tpu.core_type = #tpu.core_type<tc>, window_params = [{transform_indices = @transform_0, window_bounds = array<i64: 1, 4, 256>}, {transform_indices = @transform_1, window_bounds = array<i64: 1, 6, 256>}, {transform_indices = @transform_2, window_bounds = array<i64: 1, 2, 256>}, {transform_indices = @transform_3, window_bounds = array<i64: 1, 12, 256>}]} {
    %c0 = arith.constant 0 : index
    %c0_0 = arith.constant 0 : index
    %c0_1 = arith.constant 0 : index
    %0 = vector.load %arg2[%c0, %c0_0, %c0_1] : memref<1x4x256xf32, #tpu.memory_space<vmem>>, vector<1x4x256xf32>
    %c0_2 = arith.constant 0 : index
    %c0_3 = arith.constant 0 : index
    %c0_4 = arith.constant 0 : index
    %1 = vector.load %arg5[%c0_2, %c0_3, %c0_4] : memref<1x12x256xf32, #tpu.memory_space<vmem>>, vector<1x4x256xf32>
    tpu.vector_store %arg5[%c0_2, %c0_3, %c0_4], %0 {strides = array<i32>} : memref<1x12x256xf32, #tpu.memory_space<vmem>>, vector<1x4x256xf32>,
    %c0_5 = arith.constant 0 : index
    %c0_6 = arith.constant 0 : index
    %c0_7 = arith.constant 0 : index
    %2 = vector.load %arg3[%c0_5, %c0_6, %c0_7] : memref<1x6x256xf32, #tpu.memory_space<vmem>>, vector<1x6x256xf32>
    %c0_8 = arith.constant 0 : index
    %c4 = arith.constant 4 : index
    %c0_9 = arith.constant 0 : index
    %3 = vector.load %arg5[%c0_8, %c4, %c0_9] : memref<1x12x256xf32, #tpu.memory_space<vmem>>, vector<1x6x256xf32>
    tpu.vector_store %arg5[%c0_8, %c4, %c0_9], %2 {strides = array<i32>} : memref<1x12x256xf32, #tpu.memory_space<vmem>>, vector<1x6x256xf32>,
    %c0_10 = arith.constant 0 : index
    %c0_11 = arith.constant 0 : index
    %c0_12 = arith.constant 0 : index
    %4 = vector.load %arg4[%c0_10, %c0_11, %c0_12] : memref<1x2x256xf32, #tpu.memory_space<vmem>>, vector<1x2x256xf32>
    %c0_13 = arith.constant 0 : index
    %c10 = arith.constant 10 : index
    %c0_14 = arith.constant 0 : index
    %5 = vector.load %arg5[%c0_13, %c10, %c0_14] : memref<1x12x256xf32, #tpu.memory_space<vmem>>, vector<1x2x256xf32>
    tpu.vector_store %arg5[%c0_13, %c10, %c0_14], %4 {strides = array<i32>} : memref<1x12x256xf32, #tpu.memory_space<vmem>>, vector<1x2x256xf32>,
    return
  }
  func.func @transform_0(%arg0: i32, %arg1: i32) -> (i32, i32, i32) {
    %c0_i32 = arith.constant 0 : i32
    %c0_i32_0 = arith.constant 0 : i32
    return %arg0, %c0_i32, %arg1 : i32, i32, i32
  }
  func.func @transform_1(%arg0: i32, %arg1: i32) -> (i32, i32, i32) {
    %c0_i32 = arith.constant 0 : i32
    %c0_i32_0 = arith.constant 0 : i32
    return %arg0, %c0_i32, %arg1 : i32, i32, i32
  }
  func.func @transform_2(%arg0: i32, %arg1: i32) -> (i32, i32, i32) {
    %c0_i32 = arith.constant 0 : i32
    %c0_i32_0 = arith.constant 0 : i32
    return %arg0, %c0_i32, %arg1 : i32, i32, i32
  }
  func.func @transform_3(%arg0: i32, %arg1: i32) -> (i32, i32, i32) {
    %c0_i32 = arith.constant 0 : i32
    %c0_i32_0 = arith.constant 0 : i32
    return %arg0, %c0_i32, %arg1 : i32, i32, i32
  }
}

</mosaic_0001>

<bundles_post_ra>
// kernel: tpu_custom_call.1
= control target key start
LH: loop header
LB: loop body
LE: loop exit
PB: predicated region body
PF: predicated region fallthrough
CT: control target
= control target key end

     0   :  { %s530_s12 = smov 0   ;;  %s532_s13 = smov 0   ;;  %s569_s0 = inlined_call_operand.vmem [shape: f32[2,4,256], index: 0, kind: input, shape index: {}]   ;;  %s570_s1 = inlined_call_operand.vmem [shape: f32[2,6,256], index: 1, kind: input, shape index: {}]   ;;  %s571_s2 = inlined_call_operand.vmem [shape: f32[2,2,256], index: 2, kind: input, shape index: {}]   ;;  %s572_s3 = inlined_call_operand.vmem [shape: f32[2,12,256], index: 3, kind: output, shape index: {}]  }
   0x1   :  { %s534_s14 = smov 0  }
   0x2 LB: > { %s25_s15 = sadd.s32 1, %s503_s13  ;;  %p442_p0 = scmp.ge.s32.totalorder %s507_s14, 1  ;;  %s507_s14 = sphi %s534_s14, %s13_s14   ;;  %s503_s13 = sphi %s532_s13, %s574_s13   ;;  %s499_s12 = sphi %s530_s12, %s573_s12  }
   0x3   : > { %p27_p1 = scmp.ge.s32.totalorder %s25_s15, 2  ;;  %p192_p2 = scmp.lt.s32.totalorder %s507_s14, 3 }
   0x5   : > { %s576_s15 = smov (%p27_p1, %s25_s15), 0  ;;  %p193_p3 = pnand %p442_p0, %p192_p2 }
   0x6   : > { %p243_p4 = scmp.lt.s32.totalorder (!%p193_p3), %s499_s12, 1 }
   0x7   : > { %196 = sbr.rel (%p193_p3) target bundleno = 24 (0x18), region = 32 }
   0xc   : > { %v306_v0 = vlaneseq  ;;  %v509_v1 = vmov 1983009808   ;;  %s578_s12 = smov (!%p243_p4, %s499_s12), 1 }
   0xd   : > { %v304_v2 = vunpack.c.l.s4 %v509_v1  ;;  %s454_s16 = sshll.u32 %s578_s12, 3  ;;  %s457_s17 = sshll.u32 %s578_s12, 5 }
   0xe   : > { %v307_v4 = vshrl.u32 %v306_v0, 7  ;;  %s250_s20 = scalar_lea.vmem %s569_s0, %s454_s16  ;;  %s280_s23 = scalar_lea.vmem %s572_s3, %s457_s17 }
   0xf   : > { %v305_v3 = vunpack.c.0.s8 %v304_v2  ;;  %v282_v5 = vld [vmem:[%s250_s20] sm:$0xff]  ;;  %s455_s24 = sshll.u32 %s578_s12, 4  ;;  %s456_s25 = sshll.u32 %s578_s12, 2 }
  0x10   : > { %286 = vst [vmem:[%s280_s23] sm:$0xf] %v282_v5  ;;  %v284_v6 = vcombine.high %v282_v5, %v282_v5  ;;  %s260_s28 = scalar_lea.vmem %s570_s1, %s455_s24  ;;  %s270_s4 = scalar_lea.vmem %s571_s2, %s456_s25 }
  0x11   : > { %v308_v7 = vsub.s32 %v305_v3, %v307_v4  ;;  %v288_v8 = vld [vmem:[%s260_s28] sm:$0x3f]  ;;  %v289_v9 = vld [vmem:[%s260_s28 + $0x8] sm:$0x3f] }
  0x12   : > { %287 = vst [vmem:[%s280_s23 + $0x8] sm:$0xf] %v284_v6  ;;  %v292_v10 = vrot.slane %v288_v8, 4  ;;  %v293_v11 = vrot.slane %v289_v9, 4  ;;  %v484_v12 = vld [vmem:[%s270_s4] ss:$0 sps:$4 sm:$0xff]  }
  0x13   : > { %451 = vst.sshfl [vmem:[%s280_s23 + $0x10] sm:$0x30 pattern:$0x76325410] %v484_v12  ;;  %v309_v13 = vrot.slane %v484_v12, %v308_v7 }
  0x14   : > { %296 = vst [vmem:[%s280_s23 + $0x10] ss:$-12 sps:$4 sm:$0xf3] %v292_v10   ;;  %297 = vst [vmem:[%s280_s23 + $0x18] ss:$-12 sps:$4 sm:$0xf3] %v293_v11  }
  0x15   : > { %v310_v14 = vcombine.high %v309_v13, %v309_v13 }
  0x17   : > { %314 = vst [vmem:[%s280_s23 + $0x18] sm:$0xc] %v310_v14 }
  0x18 PF: > { %s13_s14 = sadd.s32 1, %s507_s14   ;;  %s573_s12 = smov %s503_s13 }
  0x19   : > { %p10_p5 = scmp.ge.s32.totalorder %s13_s14, 4   ;;  %s574_s13 = smov %s576_s15 }
  0x1b   :  { %12 = sbr.rel (!%p10_p5) target bundleno = 2 (0x2), region = 68 }

</bundles_post_ra>
